<compile_context>
chip_gen: v7x
topology: tpu7x:2x2x1
jax: 0.10.0
libtpu: 0.0.40
codegen_flags: <defaults>
</compile_context>

<pallas_src>
import jax
import jax.numpy as jnp
from jax.experimental import pallas as pl
from jax.experimental.pallas import tpu as pltpu

LANE = 128
SUBLANE = 8


def _round_up(v, m):
    return ((v + m - 1) // m) * m


def _mlp_kernel(x_ref, *refs):
    """refs = (w0, b0, w1, b1, ..., wL, bL, out_ref). x/weights bf16, biases f32."""
    out_ref = refs[-1]
    wb = refs[:-1]
    n_layers = len(wb) // 2

    h = x_ref[...]                                   # bf16 [TILE_B, F]
    for i in range(n_layers):
        w = wb[2 * i][...]                           # bf16 [in, out]
        b = wb[2 * i + 1][...]                       # f32  [1, out]
        lhs = h if h.dtype == jnp.bfloat16 else h.astype(jnp.bfloat16)
        acc = jnp.dot(lhs, w, preferred_element_type=jnp.float32) + b
        if i < n_layers - 1:
            h = jnp.maximum(acc, 0.0)                # ReLU (Dropout p=0 -> identity)
        else:
            h = acc                                  # final Linear: raw logits
    out_ref[...] = h.astype(out_ref.dtype)


def n_layer_dense_classifier_forward(x, params, *, tile_b=512, dropout_rate=0.0):
    """params: list of (w [in, out], b [out]) matching nn.Linear (stored as [in, out])."""
    # TODO(synk): only eval / p=0 dropout semantics are implemented.
    assert dropout_rate == 0.0, "training-mode dropout not implemented in-kernel"

    B, F = x.shape
    num_classes = params[-1][0].shape[1]

    # Lane-dense final output: pad class dim up to a multiple of 128.
    c_pad = _round_up(num_classes, LANE)
    w_last, b_last = params[-1]
    if c_pad != num_classes:
        w_last = jnp.pad(w_last, ((0, 0), (0, c_pad - num_classes)))
        b_last = jnp.pad(b_last, ((0, c_pad - num_classes),))
    layers = list(params[:-1]) + [(w_last, b_last)]

    # Row tile: big by default, but keep >= 2 grid tiles for small batches so
    # both TensorCores (v7x) get work.  Must stay a multiple of the sublane (8).
    tile_b_eff = max(SUBLANE, min(tile_b, _round_up(pl.cdiv(B, 2), SUBLANE)))
    n_tiles = pl.cdiv(B, tile_b_eff)
    b_padded = n_tiles * tile_b_eff
    if b_padded != B:                                # skip the pad pass when aligned
        x = jnp.pad(x, ((0, b_padded - B), (0, 0)))

    flat_inputs = [x.astype(jnp.bfloat16)]           # bf16 input stream
    in_specs = [pl.BlockSpec((tile_b_eff, F), lambda i: (i, 0))]
    weight_bytes = 0
    bias_bytes = 0
    for (w, b) in layers:
        w_in, w_out = w.shape
        flat_inputs.append(w.astype(jnp.bfloat16))                   # bf16 MXU operand
        flat_inputs.append(b.reshape(1, -1).astype(jnp.float32))     # f32 epilogue bias
        # Constant block -> fetched once; single-buffered (no pointless 2nd copy).
        in_specs.append(pl.BlockSpec((w_in, w_out), lambda i: (0, 0),
                                     pipeline_mode=pl.Buffered(1)))
        in_specs.append(pl.BlockSpec((1, w_out), lambda i: (0, 0),
                                     pipeline_mode=pl.Buffered(1)))
        weight_bytes += w_in * w_out * 2
        bias_bytes += _round_up(w_out, LANE) * SUBLANE * 4

    # VMEM budget: resident weights/biases + double-buffered x (bf16) and out (bf16).
    x_bytes = 2 * tile_b_eff * F * 2
    out_bytes = 2 * tile_b_eff * c_pad * 2
    needed = weight_bytes + bias_bytes + x_bytes + out_bytes
    vmem_limit = min(max(int(needed * 1.5) + (4 << 20), 16 << 20), 48 << 20)

    out = pl.pallas_call(
        _mlp_kernel,
        out_shape=jax.ShapeDtypeStruct((b_padded, c_pad), jnp.bfloat16),
        grid=(n_tiles,),
        in_specs=in_specs,
        out_specs=pl.BlockSpec((tile_b_eff, c_pad), lambda i: (i, 0)),
        compiler_params=pltpu.CompilerParams(
            dimension_semantics=("parallel",),
            vmem_limit_bytes=vmem_limit),
    )(*flat_inputs)

    return out[:B, :num_classes]


def init_params(key, num_feats, num_classes, num_layers):
    """Deterministic synthetic init; shapes match nn.Linear, stored as [in, out]."""
    params = []
    keys = jax.random.split(key, num_layers)
    for li in range(num_layers - 1):
        kw, kb = jax.random.split(keys[li])
        w = jax.random.normal(kw, (num_feats, num_feats), jnp.float32) * (1.0 / jnp.sqrt(num_feats))
        b = jax.random.normal(kb, (num_feats,), jnp.float32) * 0.01
        params.append((w, b))
    kw, kb = jax.random.split(keys[-1])
    w = jax.random.normal(kw, (num_feats, num_classes), jnp.float32) * (1.0 / jnp.sqrt(num_feats))
    b = jax.random.normal(kb, (num_classes,), jnp.float32) * 0.01
    params.append((w, b))
    return params


def reference_forward(x, params):
    """Pure-JAX reference with the same bf16-operand / f32-accum math."""
    h = x.astype(jnp.bfloat16)
    n = len(params)
    for i, (w, b) in enumerate(params):
        acc = jnp.dot(h.astype(jnp.bfloat16), w.astype(jnp.bfloat16),
                      preferred_element_type=jnp.float32) + b.astype(jnp.float32)
        h = jnp.maximum(acc, 0.0) if i < n - 1 else acc
    return h


if __name__ == "__main__":
    B, num_feats, num_classes, num_layers = 256, 128, 10, 3

    key = jax.random.PRNGKey(0)
    kx, kp = jax.random.split(key)
    x = jax.random.normal(kx, (B, num_feats), jnp.float32)
    params = init_params(kp, num_feats, num_classes, num_layers)

    logits = n_layer_dense_classifier_forward(x, params)
    jax.block_until_ready(logits)

    ref = reference_forward(x, params)
    assert logits.shape == (B, num_classes)
    # Kernel output is bf16 (f32 accumulation) -> compare in f32 with bf16 tolerance.
    err = float(jnp.max(jnp.abs(logits.astype(jnp.float32) - ref)))
    assert jnp.allclose(logits.astype(jnp.float32), ref, atol=5e-2, rtol=5e-2), err

    print("KERNEL_OK")
</pallas_src>

<mosaic_0001>
module attributes {stable_mosaic.version = 11 : i64} {
  func.func @_mlp_kernel(%arg0: i32, %arg1: memref<128x128xbf16, #tpu.memory_space<vmem>>, %arg2: memref<128x128xbf16, #tpu.memory_space<vmem>>, %arg3: memref<1x128xf32, #tpu.memory_space<vmem>>, %arg4: memref<128x128xbf16, #tpu.memory_space<vmem>>, %arg5: memref<1x128xf32, #tpu.memory_space<vmem>>, %arg6: memref<128x128xbf16, #tpu.memory_space<vmem>>, %arg7: memref<1x128xf32, #tpu.memory_space<vmem>>, %arg8: memref<128x128xbf16, #tpu.memory_space<vmem>>) attributes {dimension_semantics = [#tpu.dimension_semantics<parallel>], iteration_bounds = array<i64: 2>, scalar_prefetch = 0 : i64, scratch_operands = 0 : i64, tpu.core_type = #tpu.core_type<tc>, window_params = [{transform_indices = @transform_0, window_bounds = array<i64: 128, 128>}, {pipeline_mode = #tpu.pipeline_mode<synchronous>, transform_indices = @transform_1, window_bounds = array<i64: 128, 128>}, {pipeline_mode = #tpu.pipeline_mode<synchronous>, transform_indices = @transform_2, window_bounds = array<i64: 1, 128>}, {pipeline_mode = #tpu.pipeline_mode<synchronous>, transform_indices = @transform_3, window_bounds = array<i64: 128, 128>}, {pipeline_mode = #tpu.pipeline_mode<synchronous>, transform_indices = @transform_4, window_bounds = array<i64: 1, 128>}, {pipeline_mode = #tpu.pipeline_mode<synchronous>, transform_indices = @transform_5, window_bounds = array<i64: 128, 128>}, {pipeline_mode = #tpu.pipeline_mode<synchronous>, transform_indices = @transform_6, window_bounds = array<i64: 1, 128>}, {transform_indices = @transform_7, window_bounds = array<i64: 128, 128>}]} {
    %c0 = arith.constant 0 : index
    %c0_0 = arith.constant 0 : index
    %0 = vector.load %arg1[%c0, %c0_0] : memref<128x128xbf16, #tpu.memory_space<vmem>>, vector<128x128xbf16>
    %c0_1 = arith.constant 0 : index
    %c0_2 = arith.constant 0 : index
    %1 = vector.load %arg2[%c0_1, %c0_2] : memref<128x128xbf16, #tpu.memory_space<vmem>>, vector<128x128xbf16>
    %c0_3 = arith.constant 0 : index
    %c0_4 = arith.constant 0 : index
    %2 = vector.load %arg3[%c0_3, %c0_4] : memref<1x128xf32, #tpu.memory_space<vmem>>, vector<1x128xf32>
    %cst = arith.constant dense<0.000000e+00> : vector<128x128xf32>
    %3 = tpu.matmul %0, %1, %cst {dimension_numbers = #tpu.dot_dimension_numbers<[1], [0], [0], [1], [0, 0, 1, 1], [], []>} : vector<128x128xbf16>, vector<128x128xbf16>, vector<128x128xf32> -> vector<128x128xf32>
    %4 = vector.broadcast %2 : vector<1x128xf32> to vector<128x128xf32>
    %5 = arith.addf %3, %4 : vector<128x128xf32>
    %cst_5 = arith.constant 0.000000e+00 : f32
    %6 = vector.broadcast %cst_5 : f32 to vector<128x128xf32>
    %7 = arith.maximumf %5, %6 : vector<128x128xf32>
    %c0_6 = arith.constant 0 : index
    %c0_7 = arith.constant 0 : index
    %8 = vector.load %arg4[%c0_6, %c0_7] : memref<128x128xbf16, #tpu.memory_space<vmem>>, vector<128x128xbf16>
    %c0_8 = arith.constant 0 : index
    %c0_9 = arith.constant 0 : index
    %9 = vector.load %arg5[%c0_8, %c0_9] : memref<1x128xf32, #tpu.memory_space<vmem>>, vector<1x128xf32>
    %10 = arith.truncf %7 : vector<128x128xf32> to vector<128x128xbf16>
    %cst_10 = arith.constant dense<0.000000e+00> : vector<128x128xf32>
    %11 = tpu.matmul %10, %8, %cst_10 {dimension_numbers = #tpu.dot_dimension_numbers<[1], [0], [0], [1], [0, 0, 1, 1], [], []>} : vector<128x128xbf16>, vector<128x128xbf16>, vector<128x128xf32> -> vector<128x128xf32>
    %12 = vector.broadcast %9 : vector<1x128xf32> to vector<128x128xf32>
    %13 = arith.addf %11, %12 : vector<128x128xf32>
    %cst_11 = arith.constant 0.000000e+00 : f32
    %14 = vector.broadcast %cst_11 : f32 to vector<128x128xf32>
    %15 = arith.maximumf %13, %14 : vector<128x128xf32>
    %c0_12 = arith.constant 0 : index
    %c0_13 = arith.constant 0 : index
    %16 = vector.load %arg6[%c0_12, %c0_13] : memref<128x128xbf16, #tpu.memory_space<vmem>>, vector<128x128xbf16>
    %c0_14 = arith.constant 0 : index
    %c0_15 = arith.constant 0 : index
    %17 = vector.load %arg7[%c0_14, %c0_15] : memref<1x128xf32, #tpu.memory_space<vmem>>, vector<1x128xf32>
    %18 = arith.truncf %15 : vector<128x128xf32> to vector<128x128xbf16>
    %cst_16 = arith.constant dense<0.000000e+00> : vector<128x128xf32>
    %19 = tpu.matmul %18, %16, %cst_16 {dimension_numbers = #tpu.dot_dimension_numbers<[1], [0], [0], [1], [0, 0, 1, 1], [], []>} : vector<128x128xbf16>, vector<128x128xbf16>, vector<128x128xf32> -> vector<128x128xf32>
    %20 = vector.broadcast %17 : vector<1x128xf32> to vector<128x128xf32>
    %21 = arith.addf %19, %20 : vector<128x128xf32>
    %22 = arith.truncf %21 : vector<128x128xf32> to vector<128x128xbf16>
    %c0_17 = arith.constant 0 : index
    %c0_18 = arith.constant 0 : index
    %23 = vector.load %arg8[%c0_17, %c0_18] : memref<128x128xbf16, #tpu.memory_space<vmem>>, vector<128x128xbf16>
    tpu.vector_store %arg8[%c0_17, %c0_18], %22 {strides = array<i32>} : memref<128x128xbf16, #tpu.memory_space<vmem>>, vector<128x128xbf16>,
    return
  }
  func.func @transform_0(%arg0: i32) -> (i32, i32) {
    %c0_i32 = arith.constant 0 : i32
    %c0_i32_0 = arith.constant 0 : i32
    return %arg0, %c0_i32 : i32, i32
  }
  func.func @transform_1(%arg0: i32) -> (i32, i32) {
    %c0_i32 = arith.constant 0 : i32
    %c0_i32_0 = arith.constant 0 : i32
    %c0_i32_1 = arith.constant 0 : i32
    return %c0_i32, %c0_i32_0 : i32, i32
  }
  func.func @transform_2(%arg0: i32) -> (i32, i32) {
    %c0_i32 = arith.constant 0 : i32
    %c0_i32_0 = arith.constant 0 : i32
    %c0_i32_1 = arith.constant 0 : i32
    return %c0_i32, %c0_i32_0 : i32, i32
  }
  func.func @transform_3(%arg0: i32) -> (i32, i32) {
    %c0_i32 = arith.constant 0 : i32
    %c0_i32_0 = arith.constant 0 : i32
    %c0_i32_1 = arith.constant 0 : i32
    return %c0_i32, %c0_i32_0 : i32, i32
  }
  func.func @transform_4(%arg0: i32) -> (i32, i32) {
    %c0_i32 = arith.constant 0 : i32
    %c0_i32_0 = arith.constant 0 : i32
    %c0_i32_1 = arith.constant 0 : i32
    return %c0_i32, %c0_i32_0 : i32, i32
  }
  func.func @transform_5(%arg0: i32) -> (i32, i32) {
    %c0_i32 = arith.constant 0 : i32
    %c0_i32_0 = arith.constant 0 : i32
    %c0_i32_1 = arith.constant 0 : i32
    return %c0_i32, %c0_i32_0 : i32, i32
  }
  func.func @transform_6(%arg0: i32) -> (i32, i32) {
    %c0_i32 = arith.constant 0 : i32
    %c0_i32_0 = arith.constant 0 : i32
    %c0_i32_1 = arith.constant 0 : i32
    return %c0_i32, %c0_i32_0 : i32, i32
  }
  func.func @transform_7(%arg0: i32) -> (i32, i32) {
    %c0_i32 = arith.constant 0 : i32
    %c0_i32_0 = arith.constant 0 : i32
    return %arg0, %c0_i32 : i32, i32
  }
}

</mosaic_0001>

<bundles_post_ra>
// kernel: tpu_custom_call.1
= control target key start
LH: loop header
LB: loop body
LE: loop exit
PB: predicated region body
PF: predicated region fallthrough
CT: control target
= control target key end

     0   :  { %12 = vsyncpa [#allocation3], 0  ;;  %s2145_s0 = inlined_call_operand.hbm [shape: bf16[256,128], index: 0, kind: input, shape index: {}]   ;;  %s2146_s1 = inlined_call_operand.hbm [shape: bf16[128,128], index: 1, kind: input, shape index: {}]   ;;  %s2147_s2 = inlined_call_operand.vmem [shape: f32[1,128], index: 2, kind: input, shape index: {}]   ;;  %s2148_s3 = inlined_call_operand.hbm [shape: bf16[128,128], index: 3, kind: input, shape index: {}]   ;;  %s2149_s4 = inlined_call_operand.vmem [shape: f32[1,128], index: 4, kind: input, shape index: {}]   ;;  %s2150_s5 = inlined_call_operand.hbm [shape: bf16[128,128], index: 5, kind: input, shape index: {}]   ;;  %s2151_s6 = inlined_call_operand.vmem [shape: f32[1,128], index: 6, kind: input, shape index: {}]   ;;  %s2152_s7 = inlined_call_operand.hbm [shape: bf16[256,128], index: 7, kind: output, shape index: {}]  }
   0x1   :  { %14 = vsyncpa [#allocation3 + $0x1], 0 }
   0x2   :  { %15 = vsyncpa [#allocation6], 0 }
   0x3   :  { %16 = vsyncpa [#allocation9], 0 }
   0x4   :  { %17 = vsyncpa [#allocation4], 0 }
   0x5   :  { %19 = vsyncpa [#allocation4 + $0x1], 0  ;;  %s1804_s24 = smov 0   ;;  %s1806_s25 = smov 0  }
   0x6   :  { %s1808_s26 = smov 0   ;;  %s1810_s27 = smov 0  }
   0x7 LB: > { %s1825_s28 = sadd.s32 4294967295, %s1753_s27   ;;  %s1156_s29 = sadd.s32 4294967294, %s1753_s27   ;;  %s1753_s27 = sphi %s1810_s27, %s2178_s27   ;;  %s1749_s26 = sphi %s1808_s26, %s2177_s26   ;;  %s1745_s25 = sphi %s1806_s25, %s2176_s25   ;;  %s1741_s24 = sphi %s1804_s24, %s2175_s24  }
   0x8   : > { %p45_p0 = scmp.ne.s32.totalorder %s1745_s25, %s1741_s24  ;;  %p2153_p1 = scmp.eq.s32.totalorder %s1825_s28, 0 }
   0x9   : > { %p201_p3 = scmp.eq.s32.totalorder %s1156_s29, 1  ;;  %p1157_p5 = scmp.ge.s32.totalorder %s1753_s27, 1 }
   0xa   : > { %p1834_p4 = por %p2153_p1, %p45_p0  ;;  %p208_p7 = scmp.lt.s32.totalorder %s1753_s27, 3 }
   0xb   : > { %p1839_p6 = por %p201_p3, %p45_p0  ;;  %s1755_s10 = smov [#allocation5]  }
   0xc   : > { %s2157_s30 = scalar_select %p1834_p4, 1, 0 }
   0xd   : > { %s2158_s8 = scalar_select %p1839_p6, 1, 0 }
   0xe   : > { %p1844_p8 = pnand %p1157_p5, %p208_p7  ;;  %s220_s11 = sshll.u32 %s1755_s10, 4  ;;  %s1848_s11 = int_to_ptr.vmem [resolvable:$true] %s220_s11 }
   0xf   : > { %2159 = sst [smem:[#allocation15_spill]] %s2158_s8  ;;  %s1756_s13 = smov [#allocation7]  }
  0x10   : > { %s2160_s9 = scalar_select %p1844_p8, 1, 0 }
  0x11   : > { %p1468_p9 = pneg %p1844_p8  ;;  %s236_s14 = sshll.u32 %s1756_s13, 4  ;;  %s1859_s14 = int_to_ptr.vmem [resolvable:$true] %s236_s14 }
  0x12   : > { %s1757_s15 = smov [#allocation8]   ;;  %s1565_s19 = scalar_lea.hbm %s2146_s1, 1024 }
  0x13   : > { %p1855_p11 = pnand %p1468_p9, %p2153_p1  ;;  %s1861_s16 = sshll.u32 %s1757_s15, 4  ;;  %s253_s16 = int_to_ptr.vmem [resolvable:$true] %s1861_s16 }
  0x14   : > { %p1566_p12 = scmp.ne.s32.totalorder %s2146_s1, %s1565_s19  ;;  %p1572_p5 = scmp.lt.u32.totalorder %s1565_s19, %s2146_s1 }
  0x15   : > { %p1871_p13 = pneg %p1855_p11 }
  0x17   : > { %p1568_p0 = pnand %p1871_p13, %p1566_p12 }
  0x19   : > { %p1569_p3 = pneg %p1568_p0 }
  0x1b   : > { %p1574_p7 = pnand %p1572_p5, %p1569_p3 }
  0x1d   : > { %1577 = shalt.err (!%p1574_p7)
}
  0x1e   : > { %s1578_s10 = scalar_lea.vmem %s1848_s11, 1024  ;;  %p1586_p2 = scmp.lt.s32.totalorder %s1848_s11, %s1848_s11 }
  0x1f   : > { %p1579_p9 = scmp.ne.s32.totalorder %s1848_s11, %s1578_s10  ;;  %p1587_p6 = scmp.lt.s32.totalorder %s1578_s10, %s1578_s10 }
  0x21   : > { %p1581_p10 = pnand %p1579_p9, %p1871_p13  ;;  %p1588_p12 = por %p1587_p6, %p1586_p2 }
  0x23   : > { %p1582_p1 = pneg %p1581_p10 }
  0x25   : > { %p1589_p0 = pnand %p1588_p12, %p1582_p1 }
  0x27   : > { %1592 = shalt.err (!%p1589_p0)
}
  0x28   : > { %s1758_s13 = smov 64   ;;  %s1759_s15 = smov 4  }
  0x29   : > { %1471 = dma.hbm_to_vmem [thread:$0]  (!%p1855_p11), %s2146_s1, 1024, %s1848_s11, [#allocation6], %s1758_s13, %s1758_s13, %s1759_s15  }
  0x2a   : > { %s1593_s21 = scalar_lea.hbm %s2148_s3, 1024 }
  0x2b   : > { %p1594_p1 = scmp.ne.s32.totalorder %s2148_s3, %s1593_s21  ;;  %p1600_p10 = scmp.lt.u32.totalorder %s1593_s21, %s2148_s3 }
  0x2d   : > { %p1596_p2 = pnand %p1594_p1, %p1871_p13 }
  0x2f   : > { %p1597_p6 = pneg %p1596_p2 }
  0x31   : > { %p1602_p3 = pnand %p1600_p10, %p1597_p6 }
  0x33   : > { %1605 = shalt.err (!%p1602_p3)
}
  0x34   : > { %s1606_s11 = scalar_lea.vmem %s1859_s14, 1024  ;;  %p1614_p12 = scmp.lt.s32.totalorder %s1859_s14, %s1859_s14 }
  0x35   : > { %p1607_p5 = scmp.ne.s32.totalorder %s1859_s14, %s1606_s11  ;;  %p1615_p0 = scmp.lt.s32.totalorder %s1606_s11, %s1606_s11 }
  0x37   : > { %p1609_p7 = pnand %p1607_p5, %p1871_p13  ;;  %p1616_p1 = por %p1615_p0, %p1614_p12 }
  0x39   : > { %p1610_p9 = pneg %p1609_p7 }
  0x3b   : > { %p1617_p2 = pnand %p1616_p1, %p1610_p9 }
  0x3d   : > { %1620 = shalt.err (!%p1617_p2)
}
  0x3e   : > { %1474 = dma.hbm_to_vmem [thread:$0]  (!%p1855_p11), %s2148_s3, 1024, %s1859_s14, [#allocation6], %s1758_s13, %s1758_s13, %s1759_s15  }
  0x3f   : > { %s1621_s20 = scalar_lea.hbm %s2150_s5, 1024 }
  0x40   : > { %p1622_p6 = scmp.ne.s32.totalorder %s2150_s5, %s1621_s20  ;;  %p1628_p5 = scmp.lt.u32.totalorder %s1621_s20, %s2150_s5 }
  0x42   : > { %p1624_p10 = pnand %p1622_p6, %p1871_p13 }
  0x44   : > { %p1625_p3 = pneg %p1624_p10 }
  0x46   : > { %p1630_p7 = pnand %p1628_p5, %p1625_p3 }
  0x48   : > { %1633 = shalt.err (!%p1630_p7)
}
  0x49   : > { %s1634_s11 = scalar_lea.vmem %s253_s16, 1024  ;;  %p1642_p1 = scmp.lt.s32.totalorder %s253_s16, %s253_s16 }
  0x4a   : > { %p1635_p9 = scmp.ne.s32.totalorder %s253_s16, %s1634_s11  ;;  %p1643_p2 = scmp.lt.s32.totalorder %s1634_s11, %s1634_s11 }
  0x4c   : > { %p1637_p12 = pnand %p1635_p9, %p1871_p13  ;;  %p1644_p4 = por %p1643_p2, %p1642_p1 }
  0x4e   : > { %p1638_p0 = pneg %p1637_p12 }
  0x50   : > { %p1645_p8 = pnand %p1644_p4, %p1638_p0 }
  0x52   : > { %1648 = shalt.err (!%p1645_p8)
}
  0x53   : > { %1477 = dma.hbm_to_vmem [thread:$0]  (!%p1855_p11), %s2150_s5, 1024, %s253_s16, [#allocation9], %s1758_s13, %s1758_s13, %s1759_s15  }
  0x54   : > { %s1944_s22 = sadd.s32 1, %s1753_s27   ;;  %s32_s17 = sadd.s32 1, %s1749_s26 }
  0x55   : > { %s29_s12 = ssub.s32 %s1753_s27, %s1944_s22  ;;  %p39_p8 = scmp.ne.s32.totalorder %s1749_s26, %s1745_s25 }
  0x56   : > { %p30_p4 = scmp.eq.s32.totalorder %s29_s12, 0  ;;  %p40_p13 = scmp.eq.s32.totalorder %s1753_s27, 0 }
  0x57   : > { %p1489_p6 = scmp.lt.s32.totalorder %s1753_s27, 2  ;;  %p2163_p3 = scmp.eq.s32.totalorder %s1825_s28, 1 }
  0x58   : > { %s1954_s18 = scalar_select %p30_p4, %s1749_s26, %s32_s17  }
  0x59   : > { %p41_p10 = por %p40_p13, %p39_p8  ;;  %p1958_p5 = por %p2163_p3, %p39_p8 }
  0x5a   : > { %s269_s20 = sand.u32 1, %s1749_s26   ;;  %s1227_s21 = sshll.u32 %s1753_s27, 10 }
  0x5b   : > { %s1162_s16 = sshll.u32 %s269_s20, 6  ;;  %s1967_s10 = scalar_lea.hbm %s2145_s0, %s1227_s21 }
  0x5c   : > { %s273_s11 = scalar_lea.vmem [#allocation2], %s1162_s16  ;;  %p1969_p11 = pnand %p1489_p6, %p41_p10 }
  0x5d   : > { %s280_s14 = sshll.u32 %s273_s11, 4  ;;  %s1975_s12 = scalar_lea.sflag [#allocation3], %s269_s20  ;;  %s1973_s14 = int_to_ptr.vmem [resolvable:$true] %s280_s14 }
  0x5e   : > { %s1649_s17 = scalar_lea.hbm %s1967_s10, 1024  ;;  %p1651_p9 = pneg %p1969_p11 }
  0x5f   : > { %p1650_p7 = scmp.ne.s32.totalorder %s1967_s10, %s1649_s17  ;;  %s1654_s23 = scalar_lea.hbm %s2145_s0, 2048 }
  0x60   : > { %p1655_p1 = scmp.lt.u32.totalorder %s1967_s10, %s2145_s0  ;;  %p1656_p2 = scmp.lt.u32.totalorder %s1654_s23, %s1649_s17 }
  0x61   : > { %p1652_p12 = pnand %p1651_p9, %p1650_p7  ;;  %p1658_p8 = scmp.lt.u32.totalorder %s1649_s17, %s1967_s10 }
  0x62   : > { %p1657_p4 = por %p1656_p2, %p1655_p1 }
  0x63   : > { %p1653_p0 = pneg %p1652_p12 }
  0x64   : > { %p1659_p13 = por %p1658_p8, %p1657_p4 }
  0x66   : > { %p1660_p6 = pnand %p1659_p13, %p1653_p0 }
  0x68   : > { %1663 = shalt.err (!%p1660_p6)
}
  0x69   : > { %s1664_s20 = scalar_lea.vmem %s1973_s14, 1024  ;;  %s1760_s21 = smov [#allocation2]  }
  0x6a   : > { %p1665_p10 = scmp.ne.s32.totalorder %s1973_s14, %s1664_s20  ;;  %s1669_s16 = sshll.u32 %s1760_s21, 4  ;;  %s1670_s16 = int_to_ptr.vmem [resolvable:$false] %s1669_s16 }
  0x6b   : > { %s1671_s29 = scalar_lea.vmem %s1670_s16, 2048  ;;  %p1672_p12 = scmp.lt.s32.totalorder %s1973_s14, %s1670_s16 }
  0x6c   : > { %p1667_p3 = pnand %p1665_p10, %p1651_p9  ;;  %p1673_p1 = scmp.lt.s32.totalorder %s1671_s29, %s1664_s20 }
  0x6e   : > { %p1668_p7 = pneg %p1667_p3  ;;  %p1674_p2 = por %p1673_p1, %p1672_p12 }
  0x70   : > { %p1675_p4 = pnand %p1674_p2, %p1668_p7 }
  0x72   : > { %1678 = shalt.err (!%p1675_p4)
}
  0x73   : > { %1481 = dma.hbm_to_vmem [thread:$0]  (!%p1969_p11), %s1967_s10, 1024, %s1973_s14, %s1975_s12, %s1758_s13, %s1758_s13, %s1759_s15  }
  0x74   : > { %p2166_p9 = scmp.ne.s32.totalorder %s2160_s9, 0 }
  0x75   : > { %s2009_s17 = sand.u32 (!%p2166_p9), 1, %s1745_s25   ;;  %p2167_p0 = scmp.ne.s32.totalorder (!%p2166_p9), %s2157_s30, 0 }
  0x76   : > { %292 = sbr.rel (%p2166_p9) target bundleno = 868 (0x364), region = 48  ;;  %s1166_s23 = sshll.u32 (!%p2166_p9), %s2009_s17, 6 }
  0x77   : > { %s295_s11 = scalar_lea.sflag (!%p2166_p9), [#allocation3], %s2009_s17  ;;  %s2015_s8 = scalar_lea.vmem (!%p2166_p9), [#allocation2], %s1166_s23 }
  0x7d   : > { %1724 = dma.done.wait (%p2167_p0), %s295_s11, 1024  }
  0x7e   : > { %1726 = vsyncadd (%p2167_p0), %s295_s11, 4294966272  ;;  %p2168_p11 = scmp.eq.s32.totalorder %s1825_s28, 0 }
  0x80   : > { %1728 = dma.done.wait (%p2168_p11), [#allocation6], 2048   ;;  %p2169_p8 = pmov %p2168_p11 }
  0x82   : > { %1730 = vsyncadd (%p2169_p8), [#allocation6], 4294965248  ;;  %p2170_p13 = pmov %p2169_p8 }
  0x83   : > { %p2171_p6 = pmov %p2169_p8 }
  0x84   : > { %1732 = dma.done.wait (%p2170_p13), [#allocation9], 1024  }
  0x85   : > { %1734 = vsyncadd (%p2171_p6), [#allocation9], 4294966272  ;;  %v1533_v0 = vld [vmem:[#allocation5] sm:$0xff]   ;;  %v1534_v1 = vld [vmem:[#allocation5 + $0x8] sm:$0xff]   ;;  %s2084_s12 = scalar_lea.vmem [#allocation10], %s1166_s23  ;;  %s1244_s21 = sshll.u32 %s1825_s28, 10 }
  0x86   : > { %1340 = vmatprep.subr.bf16.mxu0 %v1533_v0  ;;  %v1535_v2 = vld [vmem:[#allocation5 + $0x10] sm:$0xff]   ;;  %v1536_v3 = vld [vmem:[#allocation5 + $0x18] sm:$0xff]   ;;  %v1541_v4 = vld [vmem:[%s2015_s8] sm:$0xff]   ;;  %s1054_s20 = sshll.u32 %s2084_s12, 4  ;;  %s2099_s23 = scalar_lea.hbm %s2152_s7, %s1244_s21  ;;  %s2094_s20 = int_to_ptr.vmem [resolvable:$true] %s1054_s20 }
  0x87   : > { %1341 = vmatpush3.bf16.msra.mxu0 %v1533_v0  ;;  %1356 = vmatprep.mubr.bf16.mxu0 %v1541_v4  ;;  %v1537_v5 = vld [vmem:[#allocation5 + $0x20] sm:$0xff]   ;;  %v1538_v6 = vld [vmem:[#allocation5 + $0x28] sm:$0xff]   ;;  %v1539_v9 = vld [vmem:[#allocation5 + $0x30] sm:$0xff]   ;;  %s1041_s28 = scalar_lea.sflag [#allocation4], %s2009_s17  ;;  %s1679_s11 = scalar_lea.vmem %s2094_s20, 1024 }
  0x88   : > { %1342 = vmatprep.subr.bf16.mxu0 %v1534_v1  ;;  %v1549_v7 = vld [vmem:[#allocation7] sm:$0xff]   ;;  %v1550_v8 = vld [vmem:[#allocation7 + $0x8] sm:$0xff]   ;;  %v1551_v10 = vld [vmem:[#allocation7 + $0x10] sm:$0xff]   ;;  %p1680_p10 = scmp.ne.s32.totalorder %s2094_s20, %s1679_s11 }
  0x89   : > { %1372 = vmatprep.subr.bf16.mxu1 %v1549_v7  ;;  %v1540_v11 = vld [vmem:[#allocation5 + $0x38] sm:$0xff]   ;;  %v1553_v13 = vld [vmem:[#allocation7 + $0x20] sm:$0xff]   ;;  %v1542_v14 = vld [vmem:[%s2015_s8 + $0x8] sm:$0xff]  }
  0x8a   : > { %1373 = vmatpush3.bf16.msra.mxu1 %v1549_v7  ;;  %v1552_v12 = vld [vmem:[#allocation7 + $0x18] sm:$0xff]   ;;  %v1543_v15 = vld [vmem:[%s2015_s8 + $0x10] sm:$0xff]   ;;  %v1554_v16 = vld [vmem:[#allocation7 + $0x28] sm:$0xff]   ;;  %p1681_p3 = pnand %p1680_p10, %p1958_p5 }
  0x8b   : > { %1343 = vmatpush3.bf16.msra.mxu0 %v1534_v1  ;;  %1374 = vmatprep.subr.bf16.mxu1 %v1550_v8  ;;  %v1544_v17 = vld [vmem:[%s2015_s8 + $0x18] sm:$0xff]   ;;  %v1545_v18 = vld [vmem:[%s2015_s8 + $0x20] sm:$0xff]   ;;  %v1546_v19 = vld [vmem:[%s2015_s8 + $0x28] sm:$0xff]  }
  0x8c   : > { %1344 = vmatprep.subr.bf16.mxu0 %v1535_v2  ;;  %v1547_v20 = vld [vmem:[%s2015_s8 + $0x30] sm:$0xff]   ;;  %v1548_v21 = vld [vmem:[%s2015_s8 + $0x38] sm:$0xff]   ;;  %v1557_v24 = vld [vmem:[#allocation8] sm:$0xff]   ;;  %p1682_p7 = pneg %p1681_p3  ;;  %s1761_s8 = smov [#allocation10]  }
  0x8d   : > { %v1555_v22 = vld [vmem:[#allocation7 + $0x30] sm:$0xff]   ;;  %v1556_v23 = vld [vmem:[#allocation7 + $0x38] sm:$0xff]   ;;  %v1558_v25 = vld [vmem:[#allocation8 + $0x8] sm:$0xff]   ;;  %s1683_s30 = sshll.u32 %s1761_s8, 4  ;;  %s1684_s30 = int_to_ptr.vmem [resolvable:$false] %s1683_s30 }
  0x8e   : > { %1375 = vmatpush3.bf16.msra.mxu1 %v1550_v8  ;;  %v1559_v26 = vld [vmem:[#allocation8 + $0x10] sm:$0xff]   ;;  %v2037_v27 = vld [vmem:[#allocation8 + $0x18] sm:$0xff]   ;;  %v2040_v28 = vld [vmem:[#allocation8 + $0x20] sm:$0xff]   ;;  %s1685_s9 = scalar_lea.vmem %s1684_s30, 2048  ;;  %p1686_p12 = scmp.lt.s32.totalorder %s2094_s20, %s1684_s30 }
  0x8f   : > { %1345 = vmatpush3.bf16.msra.mxu0 %v1535_v2  ;;  %1376 = vmatprep.subr.bf16.mxu1 %v1551_v10  ;;  %v2044_v29 = vld [vmem:[#allocation8 + $0x28] sm:$0xff]   ;;  %v2052_v30 = vld [vmem:[%s2147_s2] ss:$0 sm:$0xff]  ;;  %p1687_p1 = scmp.lt.s32.totalorder %s1685_s9, %s1679_s11 }
  0x90   : > { %1346 = vmatprep.subr.bf16.mxu0 %v1536_v3 }
  0x91   : > { %p1688_p2 = por %p1687_p1, %p1686_p12 }
  0x92   : > { %1377 = vmatpush3.bf16.msra.mxu1 %v1551_v10 }
  0x93   : > { %1347 = vmatpush3.bf16.msra.mxu0 %v1536_v3  ;;  %1378 = vmatprep.subr.bf16.mxu1 %v1552_v12  ;;  %p1689_p4 = pnand %p1688_p2, %p1682_p7 }
  0x94   : > { %1348 = vmatprep.subr.bf16.mxu0 %v1537_v5 }
  0x96   : > { %1379 = vmatpush3.bf16.msra.mxu1 %v1552_v12 }
  0x97   : > { %1349 = vmatpush3.bf16.msra.mxu0 %v1537_v5  ;;  %1380 = vmatprep.subr.bf16.mxu1 %v1553_v13 }
  0x98   : > { %1350 = vmatprep.subr.bf16.mxu0 %v1538_v6 }
  0x9a   : > { %1381 = vmatpush3.bf16.msra.mxu1 %v1553_v13 }
  0x9b   : > { %1351 = vmatpush3.bf16.msra.mxu0 %v1538_v6  ;;  %1382 = vmatprep.subr.bf16.mxu1 %v1554_v16 }
  0x9c   : > { %1352 = vmatprep.subr.bf16.mxu0 %v1539_v9 }
  0x9e   : > { %1383 = vmatpush3.bf16.msra.mxu1 %v1554_v16 }
  0x9f   : > { %1353 = vmatpush3.bf16.msra.mxu0 %v1539_v9  ;;  %1384 = vmatprep.subr.bf16.mxu1 %v1555_v22 }
  0xa0   : > { %1354 = vmatprep.subr.bf16.mxu0 %v1540_v11 }
  0xa2   : > { %1385 = vmatpush3.bf16.msra.mxu1 %v1555_v22 }
  0xa3   : > { %1355 = vmatpush3.bf16.msra.mxu0 %v1540_v11  ;;  %1386 = vmatprep.subr.bf16.mxu1 %v1556_v23 }
  0xa4   : > { %1404 = vmatprep.subr.bf16.mxu0 %v1557_v24 }
  0xa6   : > { %1357 = vmatmul.mubr.bf16.vlgmr.msra.gmra.mrb[0].mxu0 %v1542_v14  ;;  %1387 = vmatpush3.bf16.msra.mxu1 %v1556_v23  ;;  %v1563_v23 = vld [vmem:[#allocation8 + $0x30] sm:$0xff]  }
  0xa7   : > { %1360 = vmatprep.mubr.bf16.mxu0 %v1543_v15  ;;  %1436 = vmatprep.subr.bf16.mxu1 %v1557_v24 }
  0xa8   : > { %1405 = vmatpush3.bf16.msra.mxu0 %v1557_v24 }
  0xa9   : > { %1406 = vmatprep.subr.bf16.mxu0 %v1558_v25 }
  0xac   : > { %1407 = vmatpush3.bf16.msra.mxu0 %v1558_v25 }
  0xad   : > { %1408 = vmatprep.subr.bf16.mxu0 %v1559_v26 }
  0xae   : > { %1361 = vmatmul.mubr.bf16.gmra.mrb[4].mxu0 %v1544_v17 }
  0xaf   : > { %1364 = vmatprep.mubr.bf16.mxu0 %v1545_v18 }
  0xb0   : > { %1409 = vmatpush3.bf16.msra.mxu0 %v1559_v26 }
  0xb1   : > { %1410 = vmatprep.subr.bf16.mxu0 %v2037_v27 }
  0xb4   : > { %1411 = vmatpush3.bf16.msra.mxu0 %v2037_v27 }
  0xb5   : > { %1412 = vmatprep.subr.bf16.mxu0 %v2040_v28 }
  0xb6   : > { %1365 = vmatmul.mubr.bf16.gmra.mrb[8].mxu0 %v1546_v19 }
  0xb7   : > { %1368 = vmatprep.mubr.bf16.mxu0 %v1547_v20 }
  0xb8   : > { %1413 = vmatpush3.bf16.msra.mxu0 %v2040_v28 }
  0xb9   : > { %1414 = vmatprep.subr.bf16.mxu0 %v2044_v29 }
  0xbc   : > { %1415 = vmatpush3.bf16.msra.mxu0 %v2044_v29 }
  0xbd   : > { %1416 = vmatprep.subr.bf16.mxu0 %v1563_v23 }
  0xbe   : > { %1369 = vmatmul.mubr.bf16.gmra.mrb[12].mxu0 %v1548_v21 }
  0xc0   : > { %1417 = vmatpush3.bf16.msra.mxu0 %v1563_v23 }
 0x179   : > { %v1358_v31 = vpop.f32.mrb[0].mxu0 }
 0x17a   : > { %v522_v32 = vadd.f32 %v1358_v31, %v2052_v30  ;;  %v513_v33 = vpop.f32.mrb[1].mxu0 }
 0x17b   : > { %v514_v34 = vadd.f32 %v2052_v30, %v513_v33  ;;  %v1359_v35 = vpop.f32.mrb[2].mxu0 }
 0x17c   : > { %v525_v36 = vadd.f32 %v1359_v35, %v2052_v30  ;;  %v516_v37 = vpop.f32.mrb[3].mxu0  ;;  %v578_v39 = vmax.f32 %v522_v32, 0.0 }
 0x17d   : > { %v517_v38 = vadd.f32 %v2052_v30, %v516_v37  ;;  %v576_v41 = vmax.f32 %v514_v34, 0.0 }
 0x17e   : > { %v579_v40 = vmax.f32 %v525_v36, 0.0 }
 0x17f   : > { %v577_v42 = vmax.f32 %v517_v38, 0.0 }
 0x180   : > { %v610_v43 = vpack.c.bf16 %v579_v40, %v578_v39 }
 0x181   : > { %v1362_v44 = vpop.f32.mrb[4].mxu0  ;;  %v609_v45 = vpack.c.bf16 %v577_v42, %v576_v41 }
 0x182   : > { %v538_v46 = vadd.f32 %v1362_v44, %v2052_v30  ;;  %v529_v47 = vpop.f32.mrb[5].mxu0 }
 0x183   : > { %v530_v48 = vadd.f32 %v2052_v30, %v529_v47  ;;  %v1363_v49 = vpop.f32.mrb[6].mxu0  ;;  %1388 = vmatprep.mubr.bf16.mxu1 %v609_v45 }
 0x184   : > { %v541_v50 = vadd.f32 %v1363_v49, %v2052_v30  ;;  %v532_v51 = vpop.f32.mrb[7].mxu0  ;;  %1389 = vmatmul.mubr.bf16.vlgmr.msra.gmra.mrb[0].mxu1 %v610_v43  ;;  %v582_v53 = vmax.f32 %v538_v46, 0.0 }
 0x185   : > { %v533_v52 = vadd.f32 %v2052_v30, %v532_v51  ;;  %1444 = vmatpush3.bf16.msra.mxu1 %v1557_v24  ;;  %v580_v55 = vmax.f32 %v530_v48, 0.0  ;;  %v1564_v24 = vld [vmem:[#allocation8 + $0x38] sm:$0xff]  }
 0x186   : > { %v583_v54 = vmax.f32 %v541_v50, 0.0  ;;  %1437 = vmatprep.subr.bf16.mxu1 %v1558_v25  ;;  %1418 = vmatprep.subr.bf16.mxu0 %v1564_v24 }
 0x187   : > { %v581_v56 = vmax.f32 %v533_v52, 0.0  ;;  %1419 = vmatpush3.bf16.msra.mxu0 %v1564_v24 }
 0x188   : > { %v612_v57 = vpack.c.bf16 %v583_v54, %v582_v53 }
 0x189   : > { %v611_v58 = vpack.c.bf16 %v581_v56, %v580_v55  ;;  %v1366_v59 = vpop.f32.mrb[8].mxu0  ;;  %1445 = vmatpush3.bf16.msra.mxu1 %v1558_v25  ;;  %v1188_v25 = vld [vmem:[%s2149_s4] ss:$0 sm:$0xff] }
 0x18a   : > { %v554_v60 = vadd.f32 %v1366_v59, %v2052_v30  ;;  %v545_v61 = vpop.f32.mrb[9].mxu0  ;;  %1438 = vmatprep.subr.bf16.mxu1 %v1559_v26 }
 0x18b   : > { %v546_v62 = vadd.f32 %v2052_v30, %v545_v61  ;;  %v1367_v63 = vpop.f32.mrb[10].mxu0  ;;  %1392 = vmatprep.mubr.bf16.mxu1 %v611_v58 }
 0x18c   : > { %v557_v0 = vadd.f32 %v1367_v63, %v2052_v30  ;;  %v548_v1 = vpop.f32.mrb[11].mxu0  ;;  %1393 = vmatmul.mubr.bf16.gmra.mrb[4].mxu1 %v612_v57  ;;  %v586_v3 = vmax.f32 %v554_v60, 0.0 }
 0x18d   : > { %v549_v2 = vadd.f32 %v2052_v30, %v548_v1  ;;  %1446 = vmatpush3.bf16.msra.mxu1 %v1559_v26  ;;  %v584_v5 = vmax.f32 %v546_v62, 0.0 }
 0x18e   : > { %v587_v4 = vmax.f32 %v557_v0, 0.0  ;;  %1439 = vmatprep.subr.bf16.mxu1 %v2037_v27 }
 0x18f   : > { %v585_v6 = vmax.f32 %v549_v2, 0.0 }
 0x190   : > { %v614_v7 = vpack.c.bf16 %v587_v4, %v586_v3 }
 0x191   : > { %v613_v8 = vpack.c.bf16 %v585_v6, %v584_v5  ;;  %v1370_v9 = vpop.f32.mrb[12].mxu0  ;;  %1447 = vmatpush3.bf16.msra.mxu1 %v2037_v27 }
 0x192   : > { %v570_v10 = vadd.f32 %v1370_v9, %v2052_v30  ;;  %v561_v11 = vpop.f32.mrb[13].mxu0  ;;  %1440 = vmatprep.subr.bf16.mxu1 %v2040_v28 }
 0x193   : > { %v562_v12 = vadd.f32 %v2052_v30, %v561_v11  ;;  %v1371_v13 = vpop.f32.mrb[14].mxu0  ;;  %1396 = vmatprep.mubr.bf16.mxu1 %v613_v8 }
 0x194   : > { %v573_v14 = vadd.f32 %v1371_v13, %v2052_v30  ;;  %v564_v15 = vpop.f32.mrb[15].mxu0  ;;  %1397 = vmatmul.mubr.bf16.gmra.mrb[8].mxu1 %v614_v7  ;;  %v590_v17 = vmax.f32 %v570_v10, 0.0 }
 0x195   : > { %v565_v16 = vadd.f32 %v2052_v30, %v564_v15  ;;  %1448 = vmatpush3.bf16.msra.mxu1 %v2040_v28  ;;  %v588_v19 = vmax.f32 %v562_v12, 0.0 }
 0x196   : > { %v591_v18 = vmax.f32 %v573_v14, 0.0  ;;  %1441 = vmatprep.subr.bf16.mxu1 %v2044_v29 }
 0x197   : > { %v589_v20 = vmax.f32 %v565_v16, 0.0 }
 0x198   : > { %v616_v21 = vpack.c.bf16 %v591_v18, %v590_v17 }
 0x199   : > { %v615_v22 = vpack.c.bf16 %v589_v20, %v588_v19  ;;  %1449 = vmatpush3.bf16.msra.mxu1 %v2044_v29  ;;  %v1197_v19 = vld [vmem:[%s2151_s6] ss:$0 sm:$0xff] }
 0x19a   : > { %1442 = vmatprep.subr.bf16.mxu1 %v1563_v23 }
 0x19b   : > { %1400 = vmatprep.mubr.bf16.mxu1 %v615_v22 }
 0x19c   : > { %1401 = vmatmul.mubr.bf16.gmra.mrb[12].mxu1 %v616_v21 }
 0x19d   : > { %1450 = vmatpush3.bf16.msra.mxu1 %v1563_v23 }
 0x19e   : > { %1443 = vmatprep.subr.bf16.mxu1 %v1564_v24 }
 0x1a1   : > { %1451 = vmatpush3.bf16.msra.mxu1 %v1564_v24 }
 0x257   : > { %v1390_v26 = vpop.f32.mrb[0].mxu1 }
 0x258   : > { %v714_v27 = vadd.f32 %v1390_v26, %v1188_v25  ;;  %v705_v28 = vpop.f32.mrb[1].mxu1 }
 0x259   : > { %v706_v29 = vadd.f32 %v1188_v25, %v705_v28  ;;  %v1391_v30 = vpop.f32.mrb[2].mxu1 }
 0x25a   : > { %v717_v31 = vadd.f32 %v1391_v30, %v1188_v25  ;;  %v708_v32 = vpop.f32.mrb[3].mxu1  ;;  %v770_v34 = vmax.f32 %v714_v27, 0.0 }
 0x25b   : > { %v709_v33 = vadd.f32 %v1188_v25, %v708_v32  ;;  %v768_v36 = vmax.f32 %v706_v29, 0.0 }
 0x25c   : > { %v771_v35 = vmax.f32 %v717_v31, 0.0 }
 0x25d   : > { %v769_v37 = vmax.f32 %v709_v33, 0.0 }
 0x25e   : > { %v802_v38 = vpack.c.bf16 %v771_v35, %v770_v34 }
 0x25f   : > { %v801_v39 = vpack.c.bf16 %v769_v37, %v768_v36  ;;  %v1394_v40 = vpop.f32.mrb[4].mxu1 }
 0x260   : > { %v730_v41 = vadd.f32 %v1394_v40, %v1188_v25  ;;  %v721_v42 = vpop.f32.mrb[5].mxu1 }
 0x261   : > { %v722_v43 = vadd.f32 %v1188_v25, %v721_v42  ;;  %v1395_v44 = vpop.f32.mrb[6].mxu1  ;;  %1420 = vmatprep.mubr.bf16.mxu0 %v801_v39 }
 0x262   : > { %v733_v45 = vadd.f32 %v1395_v44, %v1188_v25  ;;  %v724_v46 = vpop.f32.mrb[7].mxu1  ;;  %1421 = vmatmul.mubr.bf16.vlgmr.msra.gmra.mrb[16].mxu0 %v802_v38  ;;  %v774_v48 = vmax.f32 %v730_v41, 0.0 }
 0x263   : > { %v725_v47 = vadd.f32 %v1188_v25, %v724_v46  ;;  %v772_v50 = vmax.f32 %v722_v43, 0.0 }
 0x264   : > { %v775_v49 = vmax.f32 %v733_v45, 0.0 }
 0x265   : > { %v773_v51 = vmax.f32 %v725_v47, 0.0 }
 0x266   : > { %v804_v52 = vpack.c.bf16 %v775_v49, %v774_v48 }
 0x267   : > { %v803_v53 = vpack.c.bf16 %v773_v51, %v772_v50  ;;  %v1398_v54 = vpop.f32.mrb[8].mxu1 }
 0x268   : > { %v746_v55 = vadd.f32 %v1398_v54, %v1188_v25  ;;  %v737_v56 = vpop.f32.mrb[9].mxu1 }
 0x269   : > { %v738_v57 = vadd.f32 %v1188_v25, %v737_v56  ;;  %v1399_v58 = vpop.f32.mrb[10].mxu1  ;;  %1424 = vmatprep.mubr.bf16.mxu0 %v803_v53 }
 0x26a   : > { %v749_v59 = vadd.f32 %v1399_v58, %v1188_v25  ;;  %v740_v60 = vpop.f32.mrb[11].mxu1  ;;  %1425 = vmatmul.mubr.bf16.gmra.mrb[20].mxu0 %v804_v52  ;;  %v778_v62 = vmax.f32 %v746_v55, 0.0 }
 0x26b   : > { %v741_v61 = vadd.f32 %v1188_v25, %v740_v60  ;;  %v776_v0 = vmax.f32 %v738_v57, 0.0 }
 0x26c   : > { %v779_v63 = vmax.f32 %v749_v59, 0.0 }
 0x26d   : > { %v777_v1 = vmax.f32 %v741_v61, 0.0 }
 0x26e   : > { %v806_v2 = vpack.c.bf16 %v779_v63, %v778_v62 }
 0x26f   : > { %v805_v3 = vpack.c.bf16 %v777_v1, %v776_v0  ;;  %v1402_v4 = vpop.f32.mrb[12].mxu1 }
 0x270   : > { %v762_v5 = vadd.f32 %v1402_v4, %v1188_v25  ;;  %v753_v6 = vpop.f32.mrb[13].mxu1 }
 0x271   : > { %v754_v7 = vadd.f32 %v1188_v25, %v753_v6  ;;  %v1403_v8 = vpop.f32.mrb[14].mxu1  ;;  %1428 = vmatprep.mubr.bf16.mxu1 %v805_v3 }
 0x272   : > { %v765_v9 = vadd.f32 %v1403_v8, %v1188_v25  ;;  %v756_v10 = vpop.f32.mrb[15].mxu1  ;;  %1429 = vmatmul.mubr.bf16.vlgmr.msra.gmra.mrb[16].mxu1 %v806_v2  ;;  %v782_v12 = vmax.f32 %v762_v5, 0.0 }
 0x273   : > { %v757_v11 = vadd.f32 %v1188_v25, %v756_v10  ;;  %v780_v14 = vmax.f32 %v754_v7, 0.0 }
 0x274   : > { %v783_v13 = vmax.f32 %v765_v9, 0.0 }
 0x275   : > { %v781_v15 = vmax.f32 %v757_v11, 0.0 }
 0x276   : > { %v808_v16 = vpack.c.bf16 %v783_v13, %v782_v12 }
 0x277   : > { %v807_v17 = vpack.c.bf16 %v781_v15, %v780_v14 }
 0x279   : > { %1432 = vmatprep.mubr.bf16.mxu1 %v807_v17 }
 0x27a   : > { %1433 = vmatmul.mubr.bf16.gmra.mrb[20].mxu1 %v808_v16 }
 0x335   : > { %v1422_v18 = vpop.f32.mrb[16].mxu0 }
 0x336   : > { %v897_v20 = vpop.f32.mrb[17].mxu0  ;;  %v906_v22 = vadd.f32 %v1422_v18, %v1197_v19 }
 0x337   : > { %v1423_v21 = vpop.f32.mrb[18].mxu0  ;;  %v898_v25 = vadd.f32 %v1197_v19, %v897_v20 }
 0x338   : > { %v909_v23 = vadd.f32 %v1423_v21, %v1197_v19  ;;  %v900_v24 = vpop.f32.mrb[19].mxu0 }
 0x339   : > { %v901_v26 = vadd.f32 %v1197_v19, %v900_v24 }
 0x33a   : > { %v1253_v27 = vpack.c.bf16 %v909_v23, %v906_v22 }
 0x33b   : > { %v1248_v28 = vpack.c.bf16 %v901_v26, %v898_v25 }
 0x33c   : > { %1285 = vst [vmem:[%s2084_s12 + $0x8] sm:$0xff] %v1253_v27  }
 0x33d   : > { %1249 = vst [vmem:[%s2084_s12] sm:$0xff] %v1248_v28   ;;  %v1426_v29 = vpop.f32.mrb[20].mxu0 }
 0x33e   : > { %v913_v30 = vpop.f32.mrb[21].mxu0  ;;  %v922_v32 = vadd.f32 %v1426_v29, %v1197_v19 }
 0x33f   : > { %v1427_v31 = vpop.f32.mrb[22].mxu0  ;;  %v914_v35 = vadd.f32 %v1197_v19, %v913_v30 }
 0x340   : > { %v925_v33 = vadd.f32 %v1427_v31, %v1197_v19  ;;  %v916_v34 = vpop.f32.mrb[23].mxu0 }
 0x341   : > { %v917_v36 = vadd.f32 %v1197_v19, %v916_v34 }
 0x342   : > { %v1263_v37 = vpack.c.bf16 %v925_v33, %v922_v32 }
 0x343   : > { %v1258_v38 = vpack.c.bf16 %v917_v36, %v914_v35 }
 0x344   : > { %1287 = vst [vmem:[%s2084_s12 + $0x18] sm:$0xff] %v1263_v37  }
 0x345   : > { %1286 = vst [vmem:[%s2084_s12 + $0x10] sm:$0xff] %v1258_v38   ;;  %v1430_v39 = vpop.f32.mrb[16].mxu1 }
 0x346   : > { %v929_v40 = vpop.f32.mrb[17].mxu1  ;;  %v938_v42 = vadd.f32 %v1430_v39, %v1197_v19 }
 0x347   : > { %v1431_v41 = vpop.f32.mrb[18].mxu1  ;;  %v930_v45 = vadd.f32 %v1197_v19, %v929_v40 }
 0x348   : > { %v941_v43 = vadd.f32 %v1431_v41, %v1197_v19  ;;  %v932_v44 = vpop.f32.mrb[19].mxu1 }
 0x349   : > { %v933_v46 = vadd.f32 %v1197_v19, %v932_v44 }
 0x34a   : > { %v1273_v47 = vpack.c.bf16 %v941_v43, %v938_v42 }
 0x34b   : > { %v1268_v48 = vpack.c.bf16 %v933_v46, %v930_v45 }
 0x34c   : > { %1289 = vst [vmem:[%s2084_s12 + $0x28] sm:$0xff] %v1273_v47  }
 0x34d   : > { %1288 = vst [vmem:[%s2084_s12 + $0x20] sm:$0xff] %v1268_v48   ;;  %v1434_v49 = vpop.f32.mrb[20].mxu1 }
 0x34e   : > { %v945_v50 = vpop.f32.mrb[21].mxu1  ;;  %v954_v52 = vadd.f32 %v1434_v49, %v1197_v19 }
 0x34f   : > { %v1435_v51 = vpop.f32.mrb[22].mxu1  ;;  %v946_v55 = vadd.f32 %v1197_v19, %v945_v50 }
 0x350   : > { %v957_v53 = vadd.f32 %v1435_v51, %v1197_v19  ;;  %v948_v54 = vpop.f32.mrb[23].mxu1 }
 0x351   : > { %v949_v56 = vadd.f32 %v1197_v19, %v948_v54 }
 0x352   : > { %v1283_v57 = vpack.c.bf16 %v957_v53, %v954_v52 }
 0x353   : > { %v1278_v58 = vpack.c.bf16 %v949_v56, %v946_v55 }
 0x354   : > { %1291 = vst [vmem:[%s2084_s12 + $0x38] sm:$0xff] %v1283_v57  }
 0x355   : > { %1290 = vst [vmem:[%s2084_s12 + $0x30] sm:$0xff] %v1278_v58  }
 0x356   : > { %1692 = shalt.err (!%p1689_p4)
}
 0x357   : > { %s1693_s13 = scalar_lea.hbm %s2099_s23, 1024  ;;  %s1697_s14 = scalar_lea.hbm %s2152_s7, 2048 }
 0x358   : > { %p1694_p9 = scmp.ne.s32.totalorder %s2099_s23, %s1693_s13  ;;  %p1698_p8 = scmp.lt.u32.totalorder %s2099_s23, %s2152_s7 }
 0x359   : > { %p1699_p13 = scmp.lt.u32.totalorder %s1697_s14, %s1693_s13  ;;  %p1701_p10 = scmp.lt.u32.totalorder %s1693_s13, %s2099_s23 }
 0x35a   : > { %p1695_p0 = pnand %p1694_p9, %p1958_p5 }
 0x35b   : > { %p1700_p6 = por %p1699_p13, %p1698_p8 }
 0x35c   : > { %p1696_p11 = pneg %p1695_p0 }
 0x35d   : > { %p1702_p3 = por %p1701_p10, %p1700_p6 }
 0x35f   : > { %p1703_p7 = pnand %p1702_p3, %p1696_p11 }
 0x361   : > { %1706 = shalt.err (!%p1703_p7)
}
 0x362   : > { %s1762_s16 = smov 64   ;;  %s1763_s29 = smov 4  }
 0x363   : > { %1466 = dma.vmem_to_hbm [thread:$0]  (%p1958_p5), %s2094_s20, 1024, %s2099_s23, %s1041_s28, %s1762_s16, %s1762_s16, %s1763_s29  }
 0x364 PF: > { %s2172_s11 = sld [smem:[#allocation15_spill]]  ;;  %s1069_s8 = sand.u32 1, %s1741_s24  }
 0x365   : > { %p2174_p1 = scmp.ge.s32.totalorder %s1753_s27, 2  ;;  %s1070_s30 = scalar_lea.sflag [#allocation4], %s1069_s8 }
 0x36a   : > { %p2173_p12 = scmp.ne.s32.totalorder %s2172_s11, 0 }
 0x36c   : > { %p1483_p2 = pnand %p2174_p1, %p2173_p12 }
 0x36e   : > { %1736 = dma.done.wait (!%p1483_p2), %s1070_s30, 1024  }
 0x36f   : > { %1738 = vsyncadd (!%p1483_p2), %s1070_s30, 4294966272  ;;  %p22_p4 = scmp.ge.s32.totalorder %s1944_s22, 4   ;;  %s2175_s24 = smov %s1745_s25 }
 0x370   : > { %s2176_s25 = smov %s1749_s26  ;;  %s2177_s26 = smov %s1954_s18 }
 0x371   : > { %s2178_s27 = smov %s1944_s22  ;;  %24 = sbr.rel (!%p22_p4) target bundleno = 7 (0x7), region = 105 }
 0x378   :  { %1075 = vsyncpa [#allocation3], 1 }
 0x379   :  { %1077 = vsyncpa [#allocation3 + $0x1], 1 }
 0x37a   :  { %1078 = vsyncpa [#allocation6], 1 }
 0x37b   :  { %1079 = vsyncpa [#allocation9], 1 }
 0x37c   :  { %1080 = vsyncpa [#allocation4], 1 }
 0x37d   :  { %1082 = vsyncpa [#allocation4 + $0x1], 1 }

</bundles_post_ra>
